<compile_context>
chip_gen: v7x
topology: tpu7x:2x2x1
jax: 0.10.0
libtpu: 0.0.40
codegen_flags: <defaults>
</compile_context>

<pallas_src>
import functools
import numpy as np
import jax
import jax.numpy as jnp
from jax import lax
from jax.experimental import pallas as pl
from jax.experimental.pallas import tpu as pltpu


# ------------------------------- fused kernel --------------------------------

def _down_block_kernel(x_ref, m_ref, mix_ref,
                       w1_ref, b1_ref, g1_ref, bt1_ref,
                       w3_ref, b3_ref, g3_ref, bt3_ref,
                       w2_ref, b2_ref, o_ref,
                       *, hp, wp, cpg):
    f32 = jnp.float32
    hw = hp * wp
    # tap order matches the wrapper's (O, kh, kw, I) weight flattening
    shifts = [dh * wp + dw for dh in (-1, 0, 1) for dw in (-1, 0, 1)]

    x0 = x_ref[0]                        # (cin, hw), compute dtype (bf16 or f32)
    masks = m_ref[...]                   # (9, hw),  compute dtype (0/1 zero-pad masks)
    cdt = x0.dtype

    def shifted(a, s):
        # plane[:, p] = a[:, p + s] with wrap-around; the wrapped lanes are masked by the
        # caller, which makes this exactly the zero-padded 3x3 neighbourhood.
        k = (-s) % hw
        return jnp.concatenate([a[:, hw - k:], a[:, :hw - k]], axis=1)

    def im2col(a):                       # (C, hw) -> (9*C, hw), tap-major / channel-minor
        planes = []
        for t, s in enumerate(shifts):
            planes.append(a if s == 0 else shifted(a, s) * masks[t:t + 1, :])
        return jnp.concatenate(planes, axis=0)

    def elu(v):                          # ELU(alpha=1), f32
        return jnp.where(v > 0.0, v, jnp.exp(v) - 1.0)

    def group_norm(y, g_ref, bt_ref):    # y: (hc, hw) f32; two-pass, eps=1e-5
        if cpg > 1:
            inv = 1.0 / (hw * cpg)
            mean = jnp.sum(jnp.dot(mix_ref[...], y, preferred_element_type=f32),
                           axis=1, keepdims=True) * inv
            d = y - mean
            var = jnp.sum(jnp.dot(mix_ref[...], d * d, preferred_element_type=f32),
                          axis=1, keepdims=True) * inv
        else:                            # one channel per group: stats are per row
            inv = 1.0 / hw
            mean = jnp.sum(y, axis=1, keepdims=True) * inv
            d = y - mean
            var = jnp.sum(d * d, axis=1, keepdims=True) * inv
        return d * lax.rsqrt(var + 1e-5) * g_ref[...] + bt_ref[...]

    # --- conv_1: 3x3(pad 1) + bias + ELU + GroupNorm --- one K=9*cin matmul
    y1 = jnp.dot(w1_ref[...], im2col(x0), preferred_element_type=f32) + b1_ref[...]
    h1 = group_norm(elu(y1), g1_ref, bt1_ref)                    # (hc, hw) f32

    # --- conv_3: 3x3 over cat([x, h1]) --- sublane concat + one K=9*(cin+hc) matmul
    xc = jnp.concatenate([x0, h1.astype(cdt)], axis=0)           # (cin+hc, hw)
    y3 = jnp.dot(w3_ref[...], im2col(xc), preferred_element_type=f32) + b3_ref[...]
    h2 = group_norm(elu(y3), g3_ref, bt3_ref)                    # (hc, hw) f32

    # --- conv_2: 1x1 over cat([x, h1, h2]) --- single K=cin+2*hc matmul, (cout, hw) out
    xcc = jnp.concatenate([xc, h2.astype(cdt)], axis=0)          # (cin+2*hc, hw)
    y = jnp.dot(w2_ref[...], xcc, preferred_element_type=f32) + b2_ref[...]
    o_ref[0] = y.astype(o_ref.dtype)     # lane-dense in hw (masked only when hw < 128)


# --------------------------------- wrapper -----------------------------------

def down_block_forward(x_nchw, params, do_pool=True, num_groups=8,
                       compute_dtype=jnp.bfloat16):
    n, cin, hi, wi = x_nchw.shape
    hc = params["b1"].shape[0]
    cout = params["b2"].shape[0]
    assert hc % num_groups == 0
    cpg = hc // num_groups

    # 2x2 avg-pool as a reshape+mean in XLA (memory-bound, roofline-bound op); the kernel
    # then gets a fully contiguous, lane-dense (cin, hp*wp) chunk per image.
    if do_pool:
        assert hi % 2 == 0 and wi % 2 == 0
        hp, wp = hi // 2, wi // 2
        xp = x_nchw.reshape(n, cin, hp, 2, wp, 2).mean(axis=(3, 5))
    else:
        hp, wp = hi, wi
        xp = x_nchw
    hw = hp * wp
    x_in = xp.reshape(n, cin, hw).astype(compute_dtype)          # free row-major reshape

    # weights: torch (O, I, kh, kw) -> (O, kh, kw, I) -> (O, 9*I), matching the kernel's
    # tap-major / channel-minor im2col rows.  The torch.cat's need no splitting: conv_3 /
    # conv_2 input-channel order is already [x, h1(, h2)].
    w1f = jnp.transpose(params["w1"], (0, 2, 3, 1)).reshape(hc, 9 * cin).astype(compute_dtype)
    w3f = (jnp.transpose(params["w3"], (0, 2, 3, 1))
           .reshape(hc, 9 * (cin + hc)).astype(compute_dtype))
    w2f = params["w2"].reshape(cout, cin + 2 * hc).astype(compute_dtype)

    # per-tap zero-padding masks for the flat-hw shift trick (host-side, once)
    ph, pw = np.arange(hw) // wp, np.arange(hw) % wp
    masks_np = np.stack(
        [((ph + dh >= 0) & (ph + dh < hp) & (pw + dw >= 0) & (pw + dw < wp))
         for dh in (-1, 0, 1) for dw in (-1, 0, 1)]).astype(np.float32)
    masks = jnp.asarray(masks_np, dtype=compute_dtype)           # (9, hw)

    # GroupNorm group-mixing matrix (identity when cpg == 1 -> kernel skips the matmul)
    gid = np.arange(hc) // cpg
    mix = jnp.asarray((gid[:, None] == gid[None, :]).astype(np.float32))  # (hc, hc)

    col = lambda v: v.reshape(-1, 1).astype(jnp.float32)         # per-channel params as columns
    kern = functools.partial(_down_block_kernel, hp=hp, wp=wp, cpg=cpg)

    csize = jnp.dtype(compute_dtype).itemsize
    osize = jnp.dtype(x_nchw.dtype).itemsize
    flops = 2 * n * hw * (hc * 9 * cin + hc * 9 * (cin + hc) + cout * (cin + 2 * hc))
    bytes_accessed = (x_in.size * csize
                      + (w1f.size + w3f.size + w2f.size + masks.size) * csize
                      + (mix.size + 6 * hc + cout) * 4
                      + n * cout * hw * osize)

    out = pl.pallas_call(
        kern,
        out_shape=jax.ShapeDtypeStruct((n, cout, hw), x_nchw.dtype),
        grid=(n,),
        in_specs=[
            pl.BlockSpec((1, cin, hw), lambda b: (b, 0, 0)),        # x (pooled, flat)
            pl.BlockSpec((9, hw), lambda b: (0, 0)),                # pad masks
            pl.BlockSpec((hc, hc), lambda b: (0, 0)),               # group mix
            pl.BlockSpec((hc, 9 * cin), lambda b: (0, 0)),          # w1 (im2col layout)
            pl.BlockSpec((hc, 1), lambda b: (0, 0)),                # b1
            pl.BlockSpec((hc, 1), lambda b: (0, 0)),                # gamma1
            pl.BlockSpec((hc, 1), lambda b: (0, 0)),                # beta1
            pl.BlockSpec((hc, 9 * (cin + hc)), lambda b: (0, 0)),   # w3 (im2col layout)
            pl.BlockSpec((hc, 1), lambda b: (0, 0)),                # b3
            pl.BlockSpec((hc, 1), lambda b: (0, 0)),                # gamma3
            pl.BlockSpec((hc, 1), lambda b: (0, 0)),                # beta3
            pl.BlockSpec((cout, cin + 2 * hc), lambda b: (0, 0)),   # w2 (1x1)
            pl.BlockSpec((cout, 1), lambda b: (0, 0)),              # b2
        ],
        out_specs=pl.BlockSpec((1, cout, hw), lambda b: (b, 0, 0)),
        compiler_params=pltpu.CompilerParams(dimension_semantics=("parallel",)),
        cost_estimate=pl.CostEstimate(flops=int(flops),
                                      transcendentals=int(2 * n * hw * hc),
                                      bytes_accessed=int(bytes_accessed)),
    )(x_in, masks, mix,
      w1f, col(params["b1"]), col(params["g1"]), col(params["bt1"]),
      w3f, col(params["b3"]), col(params["g3"]), col(params["bt3"]),
      w2f, col(params["b2"]))

    # (n, cout, hp*wp) is already channel-major -> free reshape to NCHW.
    return out.reshape(n, cout, hp, wp)


# ----------------------------- pure-JAX reference ----------------------------

def _ref_conv3x3_block(x, w, b, g, bt, num_groups=8):
    y = lax.conv_general_dilated(
        x, w, (1, 1), ((1, 1), (1, 1)),
        dimension_numbers=("NCHW", "OIHW", "NCHW"),
        precision=lax.Precision.HIGHEST) + b[None, :, None, None]
    y = jnp.where(y > 0.0, y, jnp.exp(y) - 1.0)
    n, c, h, w_ = y.shape
    yg = y.reshape(n, num_groups, c // num_groups, h, w_)
    mean = yg.mean(axis=(2, 3, 4), keepdims=True)
    var = ((yg - mean) ** 2).mean(axis=(2, 3, 4), keepdims=True)
    yn = ((yg - mean) / jnp.sqrt(var + 1e-5)).reshape(n, c, h, w_)
    return yn * g[None, :, None, None] + bt[None, :, None, None]


def ref_forward(x, params, do_pool=True):
    if do_pool:
        n, c, h, w = x.shape
        x = x.reshape(n, c, h // 2, 2, w // 2, 2).mean(axis=(3, 5))
    x_list = [x]
    h1 = _ref_conv3x3_block(x, params["w1"], params["b1"], params["g1"], params["bt1"])
    x_list.append(h1)
    xc = jnp.concatenate(x_list, axis=1)
    h2 = _ref_conv3x3_block(xc, params["w3"], params["b3"], params["g3"], params["bt3"])
    x_list.append(h2)
    xc = jnp.concatenate(x_list, axis=1)
    y = lax.conv_general_dilated(
        xc, params["w2"], (1, 1), ((0, 0), (0, 0)),
        dimension_numbers=("NCHW", "OIHW", "NCHW"),
        precision=lax.Precision.HIGHEST) + params["b2"][None, :, None, None]
    return y


# ----------------------------------- main ------------------------------------

if __name__ == "__main__":
    def make_params(key, in_size, h_size, out_size):
        ks = jax.random.split(key, 10)
        f32 = jnp.float32
        return {
            "w1": 0.1 * jax.random.normal(ks[0], (h_size, in_size, 3, 3), f32),
            "b1": 0.1 * jax.random.normal(ks[1], (h_size,), f32),
            "g1": 1.0 + 0.1 * jax.random.normal(ks[2], (h_size,), f32),
            "bt1": 0.1 * jax.random.normal(ks[3], (h_size,), f32),
            "w3": 0.1 * jax.random.normal(ks[4], (h_size, in_size + h_size, 3, 3), f32),
            "b3": 0.1 * jax.random.normal(ks[5], (h_size,), f32),
            "g3": 1.0 + 0.1 * jax.random.normal(ks[6], (h_size,), f32),
            "bt3": 0.1 * jax.random.normal(ks[7], (h_size,), f32),
            "w2": 0.1 * jax.random.normal(ks[8], (out_size, in_size + 2 * h_size, 1, 1), f32),
            "b2": 0.1 * jax.random.normal(ks[9], (out_size,), f32),
        }

    rng = jax.random.PRNGKey(0)
    # (in, h, out, N, H, W, do_pool): h=8 exercises cpg==1, h=16 exercises the cpg>1
    # group-mixing path flagged in review; second config also covers do_pool=False and
    # non-square, non-power-of-two spatial sizes.
    configs = [
        (4, 8, 8, 2, 16, 16, True),
        (4, 16, 8, 2, 12, 20, False),
    ]

    for cin, hcs, couts, n, hh, ww, do_pool in configs:
        kp, kx, rng = jax.random.split(rng, 3)
        params = make_params(kp, cin, hcs, couts)
        x = jax.random.normal(kx, (n, cin, hh, ww), jnp.float32)
        y_ref = ref_forward(x, params, do_pool=do_pool)

        # exact-semantics path (f32 MXU operands) -> tight tolerance
        fwd32 = jax.jit(functools.partial(down_block_forward, do_pool=do_pool,
                                          compute_dtype=jnp.float32))
        y32 = fwd32(x, params)
        jax.block_until_ready(y32)
        assert y32.shape == y_ref.shape
        np.testing.assert_allclose(np.asarray(y32), np.asarray(y_ref),
                                   rtol=2e-3, atol=2e-3)

        # default perf path (bf16 MXU operands, f32 accumulation/epilogue) -> loose
        # tolerance against the f32 reference (bf16 operand rounding only).
        fwdbf = jax.jit(functools.partial(down_block_forward, do_pool=do_pool))
        ybf = fwdbf(x, params)
        jax.block_until_ready(ybf)
        np.testing.assert_allclose(np.asarray(ybf), np.asarray(y_ref),
                                   rtol=1e-1, atol=1e-1)

    print("KERNEL_OK")
</pallas_src>

<mosaic_0001>
module attributes {stable_mosaic.version = 11 : i64} {
  func.func @_down_block_kernel(%arg0: i32, %arg1: memref<1x4x64xf32, #tpu.memory_space<vmem>>, %arg2: memref<9x64xf32, #tpu.memory_space<vmem>>, %arg3: memref<8x8xf32, #tpu.memory_space<vmem>>, %arg4: memref<8x36xf32, #tpu.memory_space<vmem>>, %arg5: memref<8x1xf32, #tpu.memory_space<vmem>>, %arg6: memref<8x1xf32, #tpu.memory_space<vmem>>, %arg7: memref<8x1xf32, #tpu.memory_space<vmem>>, %arg8: memref<8x108xf32, #tpu.memory_space<vmem>>, %arg9: memref<8x1xf32, #tpu.memory_space<vmem>>, %arg10: memref<8x1xf32, #tpu.memory_space<vmem>>, %arg11: memref<8x1xf32, #tpu.memory_space<vmem>>, %arg12: memref<8x20xf32, #tpu.memory_space<vmem>>, %arg13: memref<8x1xf32, #tpu.memory_space<vmem>>, %arg14: memref<1x8x64xf32, #tpu.memory_space<vmem>>) attributes {dimension_semantics = [#tpu.dimension_semantics<parallel>], iteration_bounds = array<i64: 2>, scalar_prefetch = 0 : i64, scratch_operands = 0 : i64, tpu.core_type = #tpu.core_type<tc>, window_params = [{transform_indices = @transform_0, window_bounds = array<i64: 1, 4, 64>}, {pipeline_mode = #tpu.pipeline_mode<synchronous>, transform_indices = @transform_1, window_bounds = array<i64: 9, 64>}, {pipeline_mode = #tpu.pipeline_mode<synchronous>, transform_indices = @transform_2, window_bounds = array<i64: 8, 8>}, {pipeline_mode = #tpu.pipeline_mode<synchronous>, transform_indices = @transform_3, window_bounds = array<i64: 8, 36>}, {pipeline_mode = #tpu.pipeline_mode<synchronous>, transform_indices = @transform_4, window_bounds = array<i64: 8, 1>}, {pipeline_mode = #tpu.pipeline_mode<synchronous>, transform_indices = @transform_5, window_bounds = array<i64: 8, 1>}, {pipeline_mode = #tpu.pipeline_mode<synchronous>, transform_indices = @transform_6, window_bounds = array<i64: 8, 1>}, {pipeline_mode = #tpu.pipeline_mode<synchronous>, transform_indices = @transform_7, window_bounds = array<i64: 8, 108>}, {pipeline_mode = #tpu.pipeline_mode<synchronous>, transform_indices = @transform_8, window_bounds = array<i64: 8, 1>}, {pipeline_mode = #tpu.pipeline_mode<synchronous>, transform_indices = @transform_9, window_bounds = array<i64: 8, 1>}, {pipeline_mode = #tpu.pipeline_mode<synchronous>, transform_indices = @transform_10, window_bounds = array<i64: 8, 1>}, {pipeline_mode = #tpu.pipeline_mode<synchronous>, transform_indices = @transform_11, window_bounds = array<i64: 8, 20>}, {pipeline_mode = #tpu.pipeline_mode<synchronous>, transform_indices = @transform_12, window_bounds = array<i64: 8, 1>}, {transform_indices = @transform_13, window_bounds = array<i64: 1, 8, 64>}]} {
    %c0 = arith.constant 0 : index
    %c0_0 = arith.constant 0 : index
    %c0_1 = arith.constant 0 : index
    %0 = vector.load %arg1[%c0, %c0_0, %c0_1] : memref<1x4x64xf32, #tpu.memory_space<vmem>>, vector<1x4x64xf32>
    %1 = vector.shape_cast %0 : vector<1x4x64xf32> to vector<4x64xf32>
    %c0_2 = arith.constant 0 : index
    %c0_3 = arith.constant 0 : index
    %2 = vector.load %arg2[%c0_2, %c0_3] : memref<9x64xf32, #tpu.memory_space<vmem>>, vector<9x64xf32>
    %c0_4 = arith.constant 0 : index
    %c0_5 = arith.constant 0 : index
    %3 = vector.load %arg4[%c0_4, %c0_5] : memref<8x36xf32, #tpu.memory_space<vmem>>, vector<8x36xf32>
    %4 = vector.extract_strided_slice %1 {offsets = [0, 55], sizes = [4, 9], strides = [1, 1]} : vector<4x64xf32> to vector<4x9xf32>
    %5 = vector.extract_strided_slice %1 {offsets = [0, 0], sizes = [4, 55], strides = [1, 1]} : vector<4x64xf32> to vector<4x55xf32>
    %6 = tpu.concatenate %4, %5 in 1 : vector<4x9xf32>, vector<4x55xf32> -> vector<4x64xf32>
    %7 = vector.extract_strided_slice %2 {offsets = [0, 0], sizes = [1, 64], strides = [1, 1]} : vector<9x64xf32> to vector<1x64xf32>
    %8 = vector.broadcast %7 : vector<1x64xf32> to vector<4x64xf32>
    %9 = arith.mulf %6, %8 : vector<4x64xf32>
    %10 = vector.extract_strided_slice %1 {offsets = [0, 56], sizes = [4, 8], strides = [1, 1]} : vector<4x64xf32> to vector<4x8xf32>
    %11 = vector.extract_strided_slice %1 {offsets = [0, 0], sizes = [4, 56], strides = [1, 1]} : vector<4x64xf32> to vector<4x56xf32>
    %12 = tpu.concatenate %10, %11 in 1 : vector<4x8xf32>, vector<4x56xf32> -> vector<4x64xf32>
    %13 = vector.extract_strided_slice %2 {offsets = [1, 0], sizes = [1, 64], strides = [1, 1]} : vector<9x64xf32> to vector<1x64xf32>
    %14 = vector.broadcast %13 : vector<1x64xf32> to vector<4x64xf32>
    %15 = arith.mulf %12, %14 : vector<4x64xf32>
    %16 = vector.extract_strided_slice %1 {offsets = [0, 57], sizes = [4, 7], strides = [1, 1]} : vector<4x64xf32> to vector<4x7xf32>
    %17 = vector.extract_strided_slice %1 {offsets = [0, 0], sizes = [4, 57], strides = [1, 1]} : vector<4x64xf32> to vector<4x57xf32>
    %18 = tpu.concatenate %16, %17 in 1 : vector<4x7xf32>, vector<4x57xf32> -> vector<4x64xf32>
    %19 = vector.extract_strided_slice %2 {offsets = [2, 0], sizes = [1, 64], strides = [1, 1]} : vector<9x64xf32> to vector<1x64xf32>
    %20 = vector.broadcast %19 : vector<1x64xf32> to vector<4x64xf32>
    %21 = arith.mulf %18, %20 : vector<4x64xf32>
    %22 = vector.extract_strided_slice %1 {offsets = [0, 63], sizes = [4, 1], strides = [1, 1]} : vector<4x64xf32> to vector<4x1xf32>
    %23 = vector.extract_strided_slice %1 {offsets = [0, 0], sizes = [4, 63], strides = [1, 1]} : vector<4x64xf32> to vector<4x63xf32>
    %24 = tpu.concatenate %22, %23 in 1 : vector<4x1xf32>, vector<4x63xf32> -> vector<4x64xf32>
    %25 = vector.extract_strided_slice %2 {offsets = [3, 0], sizes = [1, 64], strides = [1, 1]} : vector<9x64xf32> to vector<1x64xf32>
    %26 = vector.broadcast %25 : vector<1x64xf32> to vector<4x64xf32>
    %27 = arith.mulf %24, %26 : vector<4x64xf32>
    %28 = vector.extract_strided_slice %1 {offsets = [0, 1], sizes = [4, 63], strides = [1, 1]} : vector<4x64xf32> to vector<4x63xf32>
    %29 = vector.extract_strided_slice %1 {offsets = [0, 0], sizes = [4, 1], strides = [1, 1]} : vector<4x64xf32> to vector<4x1xf32>
    %30 = tpu.concatenate %28, %29 in 1 : vector<4x63xf32>, vector<4x1xf32> -> vector<4x64xf32>
    %31 = vector.extract_strided_slice %2 {offsets = [5, 0], sizes = [1, 64], strides = [1, 1]} : vector<9x64xf32> to vector<1x64xf32>
    %32 = vector.broadcast %31 : vector<1x64xf32> to vector<4x64xf32>
    %33 = arith.mulf %30, %32 : vector<4x64xf32>
    %34 = vector.extract_strided_slice %1 {offsets = [0, 7], sizes = [4, 57], strides = [1, 1]} : vector<4x64xf32> to vector<4x57xf32>
    %35 = vector.extract_strided_slice %1 {offsets = [0, 0], sizes = [4, 7], strides = [1, 1]} : vector<4x64xf32> to vector<4x7xf32>
    %36 = tpu.concatenate %34, %35 in 1 : vector<4x57xf32>, vector<4x7xf32> -> vector<4x64xf32>
    %37 = vector.extract_strided_slice %2 {offsets = [6, 0], sizes = [1, 64], strides = [1, 1]} : vector<9x64xf32> to vector<1x64xf32>
    %38 = vector.broadcast %37 : vector<1x64xf32> to vector<4x64xf32>
    %39 = arith.mulf %36, %38 : vector<4x64xf32>
    %40 = vector.extract_strided_slice %1 {offsets = [0, 8], sizes = [4, 56], strides = [1, 1]} : vector<4x64xf32> to vector<4x56xf32>
    %41 = vector.extract_strided_slice %1 {offsets = [0, 0], sizes = [4, 8], strides = [1, 1]} : vector<4x64xf32> to vector<4x8xf32>
    %42 = tpu.concatenate %40, %41 in 1 : vector<4x56xf32>, vector<4x8xf32> -> vector<4x64xf32>
    %43 = vector.extract_strided_slice %2 {offsets = [7, 0], sizes = [1, 64], strides = [1, 1]} : vector<9x64xf32> to vector<1x64xf32>
    %44 = vector.broadcast %43 : vector<1x64xf32> to vector<4x64xf32>
    %45 = arith.mulf %42, %44 : vector<4x64xf32>
    %46 = vector.extract_strided_slice %1 {offsets = [0, 9], sizes = [4, 55], strides = [1, 1]} : vector<4x64xf32> to vector<4x55xf32>
    %47 = vector.extract_strided_slice %1 {offsets = [0, 0], sizes = [4, 9], strides = [1, 1]} : vector<4x64xf32> to vector<4x9xf32>
    %48 = tpu.concatenate %46, %47 in 1 : vector<4x55xf32>, vector<4x9xf32> -> vector<4x64xf32>
    %49 = vector.extract_strided_slice %2 {offsets = [8, 0], sizes = [1, 64], strides = [1, 1]} : vector<9x64xf32> to vector<1x64xf32>
    %50 = vector.broadcast %49 : vector<1x64xf32> to vector<4x64xf32>
    %51 = arith.mulf %48, %50 : vector<4x64xf32>
    %52 = tpu.concatenate %9, %15, %21, %27, %1, %33, %39, %45, %51 in 0 : vector<4x64xf32>, vector<4x64xf32>, vector<4x64xf32>, vector<4x64xf32>, vector<4x64xf32>, vector<4x64xf32>, vector<4x64xf32>, vector<4x64xf32>, vector<4x64xf32> -> vector<36x64xf32>
    %cst = arith.constant dense<0.000000e+00> : vector<8x64xf32>
    %53 = tpu.matmul %3, %52, %cst {dimension_numbers = #tpu.dot_dimension_numbers<[1], [0], [0], [1], [0, 0, 1, 1], [], []>} : vector<8x36xf32>, vector<36x64xf32>, vector<8x64xf32> -> vector<8x64xf32>
    %c0_6 = arith.constant 0 : index
    %c0_7 = arith.constant 0 : index
    %54 = vector.load %arg5[%c0_6, %c0_7] : memref<8x1xf32, #tpu.memory_space<vmem>>, vector<8x1xf32>
    %55 = vector.broadcast %54 : vector<8x1xf32> to vector<8x64xf32>
    %56 = arith.addf %53, %55 : vector<8x64xf32>
    %cst_8 = arith.constant 0.000000e+00 : f32
    %57 = vector.broadcast %cst_8 : f32 to vector<8x64xf32>
    %58 = arith.cmpf ogt, %56, %57 : vector<8x64xf32>
    %59 = math.exp %56 : vector<8x64xf32>
    %cst_9 = arith.constant 1.000000e+00 : f32
    %60 = vector.broadcast %cst_9 : f32 to vector<8x64xf32>
    %61 = arith.subf %59, %60 : vector<8x64xf32>
    %62 = arith.select %58, %56, %61 : vector<8x64xi1>, vector<8x64xf32>
    %cst_10 = arith.constant dense<0.000000e+00> : vector<8xf32>
    %63 = vector.multi_reduction <add>, %62, %cst_10 [1] : vector<8x64xf32> to vector<8xf32>
    %64 = vector.shape_cast %63 : vector<8xf32> to vector<8x1xf32>
    %cst_11 = arith.constant 1.562500e-02 : f32
    %65 = vector.broadcast %cst_11 : f32 to vector<8x1xf32>
    %66 = arith.mulf %64, %65 : vector<8x1xf32>
    %67 = vector.broadcast %66 : vector<8x1xf32> to vector<8x64xf32>
    %68 = arith.subf %62, %67 : vector<8x64xf32>
    %69 = arith.mulf %68, %68 : vector<8x64xf32>
    %cst_12 = arith.constant dense<0.000000e+00> : vector<8xf32>
    %70 = vector.multi_reduction <add>, %69, %cst_12 [1] : vector<8x64xf32> to vector<8xf32>
    %71 = vector.shape_cast %70 : vector<8xf32> to vector<8x1xf32>
    %cst_13 = arith.constant 1.562500e-02 : f32
    %72 = vector.broadcast %cst_13 : f32 to vector<8x1xf32>
    %73 = arith.mulf %71, %72 : vector<8x1xf32>
    %cst_14 = arith.constant 9.99999974E-6 : f32
    %74 = vector.broadcast %cst_14 : f32 to vector<8x1xf32>
    %75 = arith.addf %73, %74 : vector<8x1xf32>
    %76 = math.rsqrt %75 : vector<8x1xf32>
    %77 = vector.broadcast %76 : vector<8x1xf32> to vector<8x64xf32>
    %78 = arith.mulf %68, %77 : vector<8x64xf32>
    %c0_15 = arith.constant 0 : index
    %c0_16 = arith.constant 0 : index
    %79 = vector.load %arg6[%c0_15, %c0_16] : memref<8x1xf32, #tpu.memory_space<vmem>>, vector<8x1xf32>
    %80 = vector.broadcast %79 : vector<8x1xf32> to vector<8x64xf32>
    %81 = arith.mulf %78, %80 : vector<8x64xf32>
    %c0_17 = arith.constant 0 : index
    %c0_18 = arith.constant 0 : index
    %82 = vector.load %arg7[%c0_17, %c0_18] : memref<8x1xf32, #tpu.memory_space<vmem>>, vector<8x1xf32>
    %83 = vector.broadcast %82 : vector<8x1xf32> to vector<8x64xf32>
    %84 = arith.addf %81, %83 : vector<8x64xf32>
    %85 = tpu.concatenate %1, %84 in 0 : vector<4x64xf32>, vector<8x64xf32> -> vector<12x64xf32>
    %c0_19 = arith.constant 0 : index
    %c0_20 = arith.constant 0 : index
    %86 = vector.load %arg8[%c0_19, %c0_20] : memref<8x108xf32, #tpu.memory_space<vmem>>, vector<8x108xf32>
    %87 = vector.extract_strided_slice %85 {offsets = [0, 55], sizes = [12, 9], strides = [1, 1]} : vector<12x64xf32> to vector<12x9xf32>
    %88 = vector.extract_strided_slice %85 {offsets = [0, 0], sizes = [12, 55], strides = [1, 1]} : vector<12x64xf32> to vector<12x55xf32>
    %89 = tpu.concatenate %87, %88 in 1 : vector<12x9xf32>, vector<12x55xf32> -> vector<12x64xf32>
    %90 = vector.extract_strided_slice %2 {offsets = [0, 0], sizes = [1, 64], strides = [1, 1]} : vector<9x64xf32> to vector<1x64xf32>
    %91 = vector.broadcast %90 : vector<1x64xf32> to vector<12x64xf32>
    %92 = arith.mulf %89, %91 : vector<12x64xf32>
    %93 = vector.extract_strided_slice %85 {offsets = [0, 56], sizes = [12, 8], strides = [1, 1]} : vector<12x64xf32> to vector<12x8xf32>
    %94 = vector.extract_strided_slice %85 {offsets = [0, 0], sizes = [12, 56], strides = [1, 1]} : vector<12x64xf32> to vector<12x56xf32>
    %95 = tpu.concatenate %93, %94 in 1 : vector<12x8xf32>, vector<12x56xf32> -> vector<12x64xf32>
    %96 = vector.extract_strided_slice %2 {offsets = [1, 0], sizes = [1, 64], strides = [1, 1]} : vector<9x64xf32> to vector<1x64xf32>
    %97 = vector.broadcast %96 : vector<1x64xf32> to vector<12x64xf32>
    %98 = arith.mulf %95, %97 : vector<12x64xf32>
    %99 = vector.extract_strided_slice %85 {offsets = [0, 57], sizes = [12, 7], strides = [1, 1]} : vector<12x64xf32> to vector<12x7xf32>
    %100 = vector.extract_strided_slice %85 {offsets = [0, 0], sizes = [12, 57], strides = [1, 1]} : vector<12x64xf32> to vector<12x57xf32>
    %101 = tpu.concatenate %99, %100 in 1 : vector<12x7xf32>, vector<12x57xf32> -> vector<12x64xf32>
    %102 = vector.extract_strided_slice %2 {offsets = [2, 0], sizes = [1, 64], strides = [1, 1]} : vector<9x64xf32> to vector<1x64xf32>
    %103 = vector.broadcast %102 : vector<1x64xf32> to vector<12x64xf32>
    %104 = arith.mulf %101, %103 : vector<12x64xf32>
    %105 = vector.extract_strided_slice %85 {offsets = [0, 63], sizes = [12, 1], strides = [1, 1]} : vector<12x64xf32> to vector<12x1xf32>
    %106 = vector.extract_strided_slice %85 {offsets = [0, 0], sizes = [12, 63], strides = [1, 1]} : vector<12x64xf32> to vector<12x63xf32>
    %107 = tpu.concatenate %105, %106 in 1 : vector<12x1xf32>, vector<12x63xf32> -> vector<12x64xf32>
    %108 = vector.extract_strided_slice %2 {offsets = [3, 0], sizes = [1, 64], strides = [1, 1]} : vector<9x64xf32> to vector<1x64xf32>
    %109 = vector.broadcast %108 : vector<1x64xf32> to vector<12x64xf32>
    %110 = arith.mulf %107, %109 : vector<12x64xf32>
    %111 = vector.extract_strided_slice %85 {offsets = [0, 1], sizes = [12, 63], strides = [1, 1]} : vector<12x64xf32> to vector<12x63xf32>
    %112 = vector.extract_strided_slice %85 {offsets = [0, 0], sizes = [12, 1], strides = [1, 1]} : vector<12x64xf32> to vector<12x1xf32>
    %113 = tpu.concatenate %111, %112 in 1 : vector<12x63xf32>, vector<12x1xf32> -> vector<12x64xf32>
    %114 = vector.extract_strided_slice %2 {offsets = [5, 0], sizes = [1, 64], strides = [1, 1]} : vector<9x64xf32> to vector<1x64xf32>
    %115 = vector.broadcast %114 : vector<1x64xf32> to vector<12x64xf32>
    %116 = arith.mulf %113, %115 : vector<12x64xf32>
    %117 = vector.extract_strided_slice %85 {offsets = [0, 7], sizes = [12, 57], strides = [1, 1]} : vector<12x64xf32> to vector<12x57xf32>
    %118 = vector.extract_strided_slice %85 {offsets = [0, 0], sizes = [12, 7], strides = [1, 1]} : vector<12x64xf32> to vector<12x7xf32>
    %119 = tpu.concatenate %117, %118 in 1 : vector<12x57xf32>, vector<12x7xf32> -> vector<12x64xf32>
    %120 = vector.extract_strided_slice %2 {offsets = [6, 0], sizes = [1, 64], strides = [1, 1]} : vector<9x64xf32> to vector<1x64xf32>
    %121 = vector.broadcast %120 : vector<1x64xf32> to vector<12x64xf32>
    %122 = arith.mulf %119, %121 : vector<12x64xf32>
    %123 = vector.extract_strided_slice %85 {offsets = [0, 8], sizes = [12, 56], strides = [1, 1]} : vector<12x64xf32> to vector<12x56xf32>
    %124 = vector.extract_strided_slice %85 {offsets = [0, 0], sizes = [12, 8], strides = [1, 1]} : vector<12x64xf32> to vector<12x8xf32>
    %125 = tpu.concatenate %123, %124 in 1 : vector<12x56xf32>, vector<12x8xf32> -> vector<12x64xf32>
    %126 = vector.extract_strided_slice %2 {offsets = [7, 0], sizes = [1, 64], strides = [1, 1]} : vector<9x64xf32> to vector<1x64xf32>
    %127 = vector.broadcast %126 : vector<1x64xf32> to vector<12x64xf32>
    %128 = arith.mulf %125, %127 : vector<12x64xf32>
    %129 = vector.extract_strided_slice %85 {offsets = [0, 9], sizes = [12, 55], strides = [1, 1]} : vector<12x64xf32> to vector<12x55xf32>
    %130 = vector.extract_strided_slice %85 {offsets = [0, 0], sizes = [12, 9], strides = [1, 1]} : vector<12x64xf32> to vector<12x9xf32>
    %131 = tpu.concatenate %129, %130 in 1 : vector<12x55xf32>, vector<12x9xf32> -> vector<12x64xf32>
    %132 = vector.extract_strided_slice %2 {offsets = [8, 0], sizes = [1, 64], strides = [1, 1]} : vector<9x64xf32> to vector<1x64xf32>
    %133 = vector.broadcast %132 : vector<1x64xf32> to vector<12x64xf32>
    %134 = arith.mulf %131, %133 : vector<12x64xf32>
    %135 = tpu.concatenate %92, %98, %104, %110, %85, %116, %122, %128, %134 in 0 : vector<12x64xf32>, vector<12x64xf32>, vector<12x64xf32>, vector<12x64xf32>, vector<12x64xf32>, vector<12x64xf32>, vector<12x64xf32>, vector<12x64xf32>, vector<12x64xf32> -> vector<108x64xf32>
    %cst_21 = arith.constant dense<0.000000e+00> : vector<8x64xf32>
    %136 = tpu.matmul %86, %135, %cst_21 {dimension_numbers = #tpu.dot_dimension_numbers<[1], [0], [0], [1], [0, 0, 1, 1], [], []>} : vector<8x108xf32>, vector<108x64xf32>, vector<8x64xf32> -> vector<8x64xf32>
    %c0_22 = arith.constant 0 : index
    %c0_23 = arith.constant 0 : index
    %137 = vector.load %arg9[%c0_22, %c0_23] : memref<8x1xf32, #tpu.memory_space<vmem>>, vector<8x1xf32>
    %138 = vector.broadcast %137 : vector<8x1xf32> to vector<8x64xf32>
    %139 = arith.addf %136, %138 : vector<8x64xf32>
    %cst_24 = arith.constant 0.000000e+00 : f32
    %140 = vector.broadcast %cst_24 : f32 to vector<8x64xf32>
    %141 = arith.cmpf ogt, %139, %140 : vector<8x64xf32>
    %142 = math.exp %139 : vector<8x64xf32>
    %cst_25 = arith.constant 1.000000e+00 : f32
    %143 = vector.broadcast %cst_25 : f32 to vector<8x64xf32>
    %144 = arith.subf %142, %143 : vector<8x64xf32>
    %145 = arith.select %141, %139, %144 : vector<8x64xi1>, vector<8x64xf32>
    %cst_26 = arith.constant dense<0.000000e+00> : vector<8xf32>
    %146 = vector.multi_reduction <add>, %145, %cst_26 [1] : vector<8x64xf32> to vector<8xf32>
    %147 = vector.shape_cast %146 : vector<8xf32> to vector<8x1xf32>
    %cst_27 = arith.constant 1.562500e-02 : f32
    %148 = vector.broadcast %cst_27 : f32 to vector<8x1xf32>
    %149 = arith.mulf %147, %148 : vector<8x1xf32>
    %150 = vector.broadcast %149 : vector<8x1xf32> to vector<8x64xf32>
    %151 = arith.subf %145, %150 : vector<8x64xf32>
    %152 = arith.mulf %151, %151 : vector<8x64xf32>
    %cst_28 = arith.constant dense<0.000000e+00> : vector<8xf32>
    %153 = vector.multi_reduction <add>, %152, %cst_28 [1] : vector<8x64xf32> to vector<8xf32>
    %154 = vector.shape_cast %153 : vector<8xf32> to vector<8x1xf32>
    %cst_29 = arith.constant 1.562500e-02 : f32
    %155 = vector.broadcast %cst_29 : f32 to vector<8x1xf32>
    %156 = arith.mulf %154, %155 : vector<8x1xf32>
    %cst_30 = arith.constant 9.99999974E-6 : f32
    %157 = vector.broadcast %cst_30 : f32 to vector<8x1xf32>
    %158 = arith.addf %156, %157 : vector<8x1xf32>
    %159 = math.rsqrt %158 : vector<8x1xf32>
    %160 = vector.broadcast %159 : vector<8x1xf32> to vector<8x64xf32>
    %161 = arith.mulf %151, %160 : vector<8x64xf32>
    %c0_31 = arith.constant 0 : index
    %c0_32 = arith.constant 0 : index
    %162 = vector.load %arg10[%c0_31, %c0_32] : memref<8x1xf32, #tpu.memory_space<vmem>>, vector<8x1xf32>
    %163 = vector.broadcast %162 : vector<8x1xf32> to vector<8x64xf32>
    %164 = arith.mulf %161, %163 : vector<8x64xf32>
    %c0_33 = arith.constant 0 : index
    %c0_34 = arith.constant 0 : index
    %165 = vector.load %arg11[%c0_33, %c0_34] : memref<8x1xf32, #tpu.memory_space<vmem>>, vector<8x1xf32>
    %166 = vector.broadcast %165 : vector<8x1xf32> to vector<8x64xf32>
    %167 = arith.addf %164, %166 : vector<8x64xf32>
    %168 = tpu.concatenate %85, %167 in 0 : vector<12x64xf32>, vector<8x64xf32> -> vector<20x64xf32>
    %c0_35 = arith.constant 0 : index
    %c0_36 = arith.constant 0 : index
    %169 = vector.load %arg12[%c0_35, %c0_36] : memref<8x20xf32, #tpu.memory_space<vmem>>, vector<8x20xf32>
    %cst_37 = arith.constant dense<0.000000e+00> : vector<8x64xf32>
    %170 = tpu.matmul %169, %168, %cst_37 {dimension_numbers = #tpu.dot_dimension_numbers<[1], [0], [0], [1], [0, 0, 1, 1], [], []>} : vector<8x20xf32>, vector<20x64xf32>, vector<8x64xf32> -> vector<8x64xf32>
    %c0_38 = arith.constant 0 : index
    %c0_39 = arith.constant 0 : index
    %171 = vector.load %arg13[%c0_38, %c0_39] : memref<8x1xf32, #tpu.memory_space<vmem>>, vector<8x1xf32>
    %172 = vector.broadcast %171 : vector<8x1xf32> to vector<8x64xf32>
    %173 = arith.addf %170, %172 : vector<8x64xf32>
    %c0_40 = arith.constant 0 : index
    %c0_41 = arith.constant 0 : index
    %c0_42 = arith.constant 0 : index
    %174 = vector.load %arg14[%c0_40, %c0_41, %c0_42] : memref<1x8x64xf32, #tpu.memory_space<vmem>>, vector<1x8x64xf32>
    %175 = vector.shape_cast %174 : vector<1x8x64xf32> to vector<8x64xf32>
    %176 = vector.shape_cast %173 : vector<8x64xf32> to vector<1x8x64xf32>
    tpu.vector_store %arg14[%c0_40, %c0_41, %c0_42], %176 {strides = array<i32>} : memref<1x8x64xf32, #tpu.memory_space<vmem>>, vector<1x8x64xf32>,
    return
  }
  func.func @transform_0(%arg0: i32) -> (i32, i32, i32) {
    %c0_i32 = arith.constant 0 : i32
    %c0_i32_0 = arith.constant 0 : i32
    %c0_i32_1 = arith.constant 0 : i32
    return %arg0, %c0_i32, %c0_i32_0 : i32, i32, i32
  }
  func.func @transform_1(%arg0: i32) -> (i32, i32) {
    %c0_i32 = arith.constant 0 : i32
    %c0_i32_0 = arith.constant 0 : i32
    %c0_i32_1 = arith.constant 0 : i32
    return %c0_i32, %c0_i32_0 : i32, i32
  }
  func.func @transform_2(%arg0: i32) -> (i32, i32) {
    %c0_i32 = arith.constant 0 : i32
    %c0_i32_0 = arith.constant 0 : i32
    %c0_i32_1 = arith.constant 0 : i32
    return %c0_i32, %c0_i32_0 : i32, i32
  }
  func.func @transform_3(%arg0: i32) -> (i32, i32) {
    %c0_i32 = arith.constant 0 : i32
    %c0_i32_0 = arith.constant 0 : i32
    %c0_i32_1 = arith.constant 0 : i32
    return %c0_i32, %c0_i32_0 : i32, i32
  }
  func.func @transform_4(%arg0: i32) -> (i32, i32) {
    %c0_i32 = arith.constant 0 : i32
    %c0_i32_0 = arith.constant 0 : i32
    %c0_i32_1 = arith.constant 0 : i32
    return %c0_i32, %c0_i32_0 : i32, i32
  }
  func.func @transform_5(%arg0: i32) -> (i32, i32) {
    %c0_i32 = arith.constant 0 : i32
    %c0_i32_0 = arith.constant 0 : i32
    %c0_i32_1 = arith.constant 0 : i32
    return %c0_i32, %c0_i32_0 : i32, i32
  }
  func.func @transform_6(%arg0: i32) -> (i32, i32) {
    %c0_i32 = arith.constant 0 : i32
    %c0_i32_0 = arith.constant 0 : i32
    %c0_i32_1 = arith.constant 0 : i32
    return %c0_i32, %c0_i32_0 : i32, i32
  }
  func.func @transform_7(%arg0: i32) -> (i32, i32) {
    %c0_i32 = arith.constant 0 : i32
    %c0_i32_0 = arith.constant 0 : i32
    %c0_i32_1 = arith.constant 0 : i32
    return %c0_i32, %c0_i32_0 : i32, i32
  }
  func.func @transform_8(%arg0: i32) -> (i32, i32) {
    %c0_i32 = arith.constant 0 : i32
    %c0_i32_0 = arith.constant 0 : i32
    %c0_i32_1 = arith.constant 0 : i32
    return %c0_i32, %c0_i32_0 : i32, i32
  }
  func.func @transform_9(%arg0: i32) -> (i32, i32) {
    %c0_i32 = arith.constant 0 : i32
    %c0_i32_0 = arith.constant 0 : i32
    %c0_i32_1 = arith.constant 0 : i32
    return %c0_i32, %c0_i32_0 : i32, i32
  }
  func.func @transform_10(%arg0: i32) -> (i32, i32) {
    %c0_i32 = arith.constant 0 : i32
    %c0_i32_0 = arith.constant 0 : i32
    %c0_i32_1 = arith.constant 0 : i32
    return %c0_i32, %c0_i32_0 : i32, i32
  }
  func.func @transform_11(%arg0: i32) -> (i32, i32) {
    %c0_i32 = arith.constant 0 : i32
    %c0_i32_0 = arith.constant 0 : i32
    %c0_i32_1 = arith.constant 0 : i32
    return %c0_i32, %c0_i32_0 : i32, i32
  }
  func.func @transform_12(%arg0: i32) -> (i32, i32) {
    %c0_i32 = arith.constant 0 : i32
    %c0_i32_0 = arith.constant 0 : i32
    %c0_i32_1 = arith.constant 0 : i32
    return %c0_i32, %c0_i32_0 : i32, i32
  }
  func.func @transform_13(%arg0: i32) -> (i32, i32, i32) {
    %c0_i32 = arith.constant 0 : i32
    %c0_i32_0 = arith.constant 0 : i32
    %c0_i32_1 = arith.constant 0 : i32
    return %arg0, %c0_i32, %c0_i32_0 : i32, i32, i32
  }
}

</mosaic_0001>

<bundles_post_ra>
// kernel: down_block_forward.1
= control target key start
LH: loop header
LB: loop body
LE: loop exit
PB: predicated region body
PF: predicated region fallthrough
CT: control target
= control target key end

     0   :  { %s1365_s24 = smov 0   ;;  %s1635_s0 = inlined_call_operand.vmem [shape: f32[2,4,64], index: 0, kind: input, shape index: {}]   ;;  %s1636_s1 = inlined_call_operand.vmem [shape: f32[9,64], index: 1, kind: input, shape index: {}]   ;;  %s1637_s2 = inlined_call_operand.vmem [shape: f32[8,8], index: 2, kind: input, shape index: {}]   ;;  %s1638_s3 = inlined_call_operand.vmem [shape: f32[8,36], index: 3, kind: input, shape index: {}]   ;;  %s1639_s4 = inlined_call_operand.vmem [shape: f32[8,1], index: 4, kind: input, shape index: {}]   ;;  %s1640_s5 = inlined_call_operand.vmem [shape: f32[8,1], index: 5, kind: input, shape index: {}]   ;;  %s1641_s6 = inlined_call_operand.vmem [shape: f32[8,1], index: 6, kind: input, shape index: {}]   ;;  %s1642_s7 = inlined_call_operand.vmem [shape: f32[8,108], index: 7, kind: input, shape index: {}]   ;;  %s1643_s8 = inlined_call_operand.vmem [shape: f32[8,1], index: 8, kind: input, shape index: {}]   ;;  %s1644_s9 = inlined_call_operand.vmem [shape: f32[8,1], index: 9, kind: input, shape index: {}]   ;;  %s1645_s10 = inlined_call_operand.vmem [shape: f32[8,1], index: 10, kind: input, shape index: {}]   ;;  %s1646_s11 = inlined_call_operand.vmem [shape: f32[8,20], index: 11, kind: input, shape index: {}]   ;;  %s1647_s12 = inlined_call_operand.vmem [shape: f32[8,1], index: 12, kind: input, shape index: {}]   ;;  %s1648_s13 = inlined_call_operand.vmem [shape: f32[2,8,64], index: 13, kind: output, shape index: {}]  }
   0x1 LB: > { %s1100_s25 = sadd.s32 4294967295, %s1272_s24   ;;  %p1104_p0 = scmp.ge.s32.totalorder %s1272_s24, 1  ;;  %s1272_s24 = sphi %s1365_s24, %s23_s24  }
   0x2   : > { %p386_p1 = scmp.lt.s32.totalorder %s1272_s24, 3 }
   0x4   : > { %p387_p2 = pnand %p1104_p0, %p386_p1 }
   0x5   : > { %p428_p3 = scmp.lt.s32.totalorder (!%p387_p2), %s1100_s25, 1  ;;  %s1274_s30 = smov (!%p387_p2), 65   ;;  %v1278_v1 = vmov (!%p387_p2), 0.0|0.0   ;;  %vm1287_vm0 = vmmov (!%p387_p2), 0   ;;  %v1288_v2 = vmov (!%p387_p2), 0.0   ;;  %v1289_v3 = vmov (!%p387_p2), 0  }
   0x6   : > { %390 = sbr.rel (%p387_p2) target bundleno = 1667 (0x683), region = 72  ;;  %s1275_s14 = smov (!%p387_p2), 72   ;;  %1196 = vmatprep.subr.bf16.mxu0 (!%p387_p2), %v1278_v1  ;;  %1202 = vmatprep.subr.bf16.mxu1 (!%p387_p2), %v1278_v1  ;;  %v562_v4 = vld [vmem:[%s1639_s4] sm:$0xff] (!%p387_p2)  ;;  %v449_v5 = vlaneseq (!%p387_p2)  ;;  %vm486_vm1 = vcmask (!%p387_p2), 7168   ;;  %vm460_vm2 = vcmask (!%p387_p2), 64512   ;;  %vm447_vm3 = vcmask (!%p387_p2), 72704  }
   0x7   : > { %s1276_s15 = smov (!%p387_p2), 1   ;;  %s1277_s2 = smov (!%p387_p2), 8   ;;  %1153 = vmatprep.mubr.msk.f32.mxu0 (!%p387_p2), %vm1287_vm0, %v1288_v2  ;;  %1184 = vmatprep.mubr.msk.f32.mxu1 (!%p387_p2), %vm1287_vm0, %v1288_v2  ;;  %v437_v11 = vld [vmem:[%s1636_s1] sm:$0xff] (!%p387_p2)  ;;  %vm473_vm4 = vcmask (!%p387_p2), 56320   ;;  %vm499_vm5 = vcmask (!%p387_p2), 515072   ;;  %vm557_vm6 = vcmask (!%p387_p2), 1043456  }
   0x8   : > { %s1279_s16 = smov (!%p387_p2), 9   ;;  %s1280_s17 = smov (!%p387_p2), 73   ;;  %1256 = vset.pattern.permute.xlu0 (!%p387_p2), %v1289_v3  ;;  %1257 = vset.pattern.permute.xlu1 (!%p387_p2), %v1289_v3  ;;  %v450_v6 = vshrl.u32 (!%p387_p2), %v449_v5, 7  ;;  %vm525_vm7 = vcmask (!%p387_p2), 457728   ;;  %vm512_vm8 = vcmask (!%p387_p2), 465920   ;;  %vm538_vm9 = vcmask (!%p387_p2), 449536  }
   0x9   : > { %s1281_s18 = smov (!%p387_p2), 7   ;;  %s1282_s19 = smov (!%p387_p2), 71   ;;  %v1462_v60 = vld [vmem:[%s1636_s1 + $0x8] ss:$0 sm:$0xff] (!%p387_p2)  ;;  %vm568_vm10 = vcmask (!%p387_p2), 293888   ;;  %vm650_vm11 = vcmask (!%p387_p2), 523264  }
   0xa   : > { %s1655_s20 = smov (!%p387_p2), 63   ;;  %s1284_s21 = smov (!%p387_p2), 127   ;;  %v490_v9 = vsub.s32 (!%p387_p2), 3, %v450_v6  ;;  %v464_v10 = vsub.s32 (!%p387_p2), 1, %v450_v6  ;;  %v451_v14 = vsub.s32 (!%p387_p2), 0, %v450_v6  ;;  %v477_v17 = vsub.s32 (!%p387_p2), 2, %v450_v6 }
   0xb   : > { %s1649_s22 = smov (!%p387_p2), 56   ;;  %s1651_s23 = smov (!%p387_p2), 120   ;;  %v503_v30 = vsub.s32 (!%p387_p2), 5, %v450_v6  ;;  %v529_v35 = vsub.s32 (!%p387_p2), 7, %v450_v6  ;;  %v516_v44 = vsub.s32 (!%p387_p2), 6, %v450_v6  ;;  %vm1294_vm13 = vmmov (!%p387_p2), 1  }
   0xc   : > { %s1291_s27 = smov (!%p387_p2), 121   ;;  %s1292_s28 = smov (!%p387_p2), 55   ;;  %v1425_v15 = vrot.slane (!%p387_p2), %v437_v11, %v490_v9  ;;  %v1427_v16 = vrot.slane (!%p387_p2), %v437_v11, %v464_v10  ;;  %v1431_v21 = vrot.slane (!%p387_p2), %v437_v11, %v451_v14  ;;  %v1436_v26 = vrot.slane (!%p387_p2), %v437_v11, %v477_v17  ;;  %v664_v14 = vld [vmem:[%s1640_s5] sm:$0xff] (!%p387_p2)  ;;  %vm1222_vm14 = vmpackc.low (!%p387_p2), %vm557_vm6, %vm1294_vm13 }
   0xd   : > { %s1662_s25 = smov (!%p428_p3, %s1100_s25), 1  ;;  %v1441_v37 = vrot.slane %v437_v11, %v503_v30  ;;  %v1446_v43 = vrot.slane %v437_v11, %v529_v35  ;;  %v1452_v50 = vrot.slane %v437_v11, %v516_v44  ;;  %vm850_vm15 = vcmask 883712  }
   0xe   : > { %s1105_s26 = sshll.u32 %s1662_s25, 2 }
   0xf   : > { %s431_s29 = scalar_lea.vmem %s1635_s0, %s1105_s26  ;;  %s1653_s26 = smov 57  }
  0x10   : > { %v1379_v0 = vld [vmem:[%s431_s29] sm:$0xf]  ;;  %s1293_s29 = smov 119  }
  0x11   : > { %480 = vrot.lane.b32.xlu1 %v1379_v0, %s1274_s30  ;;  %454 = vrot.lane.b32.xlu0 %v1379_v0, %s1275_s14 }
  0x15   : > { %483 = vrot.lane.b32.xlu1 %v1379_v0, %s1276_s15  ;;  %457 = vrot.lane.b32.xlu0 %v1379_v0, %s1277_s2 }
  0x19   : > { %444 = vrot.lane.b32.xlu1 %v1379_v0, %s1279_s16  ;;  %441 = vrot.lane.b32.xlu0 %v1379_v0, %s1280_s17 }
  0x1d   : > { %470 = vrot.lane.b32.xlu1 %v1379_v0, %s1281_s18  ;;  %467 = vrot.lane.b32.xlu0 %v1379_v0, %s1282_s19 }
  0x21   : > { %496 = vrot.lane.b32.xlu1 %v1379_v0, %s1655_s20  ;;  %493 = vrot.lane.b32.xlu0 %v1379_v0, %s1284_s21  ;;  %s1657_s20 = smov 63  }
  0x25   : > { %522 = vrot.lane.b32.xlu1 %v1379_v0, %s1649_s22  ;;  %519 = vrot.lane.b32.xlu0 %v1379_v0, %s1651_s23  ;;  %s1658_s22 = smov 120   ;;  %s1659_s23 = smov 56  }
  0x29   : > { %509 = vrot.lane.b32.xlu1 %v1379_v0, %s1653_s26  ;;  %506 = vrot.lane.b32.xlu0 %v1379_v0, %s1291_s27 }
  0x2d   : > { %535 = vrot.lane.b32.xlu1 %v1379_v0, %s1292_s28  ;;  %532 = vrot.lane.b32.xlu0 %v1379_v0, %s1293_s29 }
  0x31   : > { %565 = vperm.xlu0 %1256, %v562_v4   ;;  %v439_v4 = vld [vmem:[%s1638_s3] sm:$0xff] }
  0x83   : > { %v481_v7 = vpop.permute.xlu1 %480  ;;  %v455_v8 = vpop.permute.xlu0 %454 }
  0x87   : > { %v484_v12 = vpop.permute.xlu1 %483  ;;  %v458_v13 = vpop.permute.xlu0 %457 }
  0x88   : > { %v487_v18 = vsel %vm486_vm1, %v481_v7, %v484_v12  ;;  %v461_v19 = vsel %vm460_vm2, %v455_v8, %v458_v13 }
  0x89   : > { %v492_v24 = vmul.f32 %v1425_v15, %v487_v18  ;;  %v466_v25 = vmul.f32 %v1427_v16, %v461_v19 }
  0x8b   : > { %v445_v20 = vpop.permute.xlu1 %444  ;;  %v442_v22 = vpop.permute.xlu0 %441  ;;  %v549_v32 = vrot.slane %v492_v24, 4  ;;  %v546_v33 = vrot.slane %v466_v25, 4 }
  0x8c   : > { %v448_v23 = vsel %vm447_vm3, %v442_v22, %v445_v20 }
  0x8d   : > { %v453_v27 = vmul.f32 %v1431_v21, %v448_v23  ;;  %v671_v23 = vld [vmem:[%s1641_s6] sm:$0xff] }
  0x8f   : > { %v471_v28 = vpop.permute.xlu1 %470  ;;  %v468_v29 = vpop.permute.xlu0 %467  ;;  %v558_v39 = vsel %vm557_vm6, %v453_v27, %v546_v33 }
  0x90   : > { %v474_v31 = vsel %vm473_vm4, %v468_v29, %v471_v28 }
  0x91   : > { %v479_v34 = vmul.f32 %v1436_v26, %v474_v31 }
  0x93   : > { %v497_v36 = vpop.permute.xlu1 %496  ;;  %v494_v38 = vpop.permute.xlu0 %493  ;;  %v559_v40 = vsel %vm557_vm6, %v479_v34, %v549_v32 }
  0x94   : > { %v500_v41 = vsel %vm499_vm5, %v494_v38, %v497_v36  ;;  %v1197_v42 = vpack.c.bf16 %v559_v40, %v558_v39 }
  0x95   : > { %v505_v45 = vmul.f32 %v1441_v37, %v500_v41 }
  0x96   : > { %1198 = vmatpush3.bf16.msra.mxu0 %v1197_v42 }
  0x97   : > { %v523_v46 = vpop.permute.xlu1 %522  ;;  %v520_v47 = vpop.permute.xlu0 %519  ;;  %1199 = vmatprep.subr.bf16.mxu0 %v1278_v1  ;;  %v552_v51 = vrot.slane %v505_v45, 4 }
  0x98   : > { %v526_v48 = vsel %vm525_vm7, %v520_v47, %v523_v46 }
  0x99   : > { %v531_v49 = vmul.f32 %v1446_v43, %v526_v48  ;;  %v560_v58 = vsel %vm557_vm6, %v1379_v0, %v552_v51 }
  0x9b   : > { %v510_v52 = vpop.permute.xlu1 %509  ;;  %v507_v53 = vpop.permute.xlu0 %506  ;;  %v555_v55 = vrot.slane %v531_v49, 4 }
  0x9c   : > { %v513_v54 = vsel %vm512_vm8, %v507_v53, %v510_v52 }
  0x9d   : > { %v518_v56 = vmul.f32 %v1452_v50, %v513_v54 }
  0x9f   : > { %v536_v57 = vpop.permute.xlu1 %535  ;;  %v561_v59 = vsel %vm557_vm6, %v518_v56, %v555_v55  ;;  %v533_v61 = vpop.permute.xlu0 %532 }
  0xa0   : > { %v1200_v62 = vpack.c.bf16 %v561_v59, %v560_v58  ;;  %v539_v63 = vsel %vm538_vm9, %v533_v61, %v536_v57 }
  0xa1   : > { %v544_v3 = vmul.f32 %v1462_v60, %v539_v63 }
  0xa2   : > { %1201 = vmatpush3.bf16.msra.mxu0 %v1200_v62 }
  0xa3   : > { %1151 = vmatprep.subr.mxu0 %v1288_v2 }
  0xa6   : > { %1152 = vmatpush3.msk.msra.mxu0 %vm557_vm6, %v544_v3 }
  0xa7   : > { %1154 = vmatmul.mubr.msk.f32.vlgmr.msra.gmra.mrb[0].mxu0 %vm568_vm10, %v439_v4  ;;  %1224 = vmatprep.subr.bf16.mxu0 %v1278_v1 }
  0xa8   : > { %1193 = vmatprep.mubr.msk.f32.mxu0 %vm1287_vm0, %v1288_v2 }
  0xb0   : > { %v566_v5 = vpop.permute.xlu0 %565 }
 0x17a   : > { %v641_v6 = vpop.f32.mrb[0].mxu0 }
 0x17b   : > { %v642_v7 = vadd.f32 %v641_v6, %v566_v5  ;;  %v1155_v8 = vpop.f32.mrb[1].mxu0 }
 0x17d   : > { %v646_v9 = vmul.f32 1.442695, %v642_v7  ;;  %vm645_vm12 = vcmp.gt.f32.partialorder %v642_v7, 0.0 }
 0x17f   : > { %1258 = vpow2.f32 %v646_v9 }
 0x189   : > { %v1259_v10 = vpop.eup %1258 }
 0x18a   : > { %v1110_v11 = vadd.f32 -1.0, %v1259_v10 }
 0x18c   : > { %v649_v12 = vsel %vm645_vm12, %v642_v7, %v1110_v11 }
 0x18d   : > { %v651_v13 = vsel %vm650_vm11, %v649_v12, 0.0 }
 0x18e   : > { %652 = vadd.xlane.f32.xlu1 %v651_v13 }
 0x19f   : > { %667 = vperm.xlu1 %1257, %v664_v14  }
 0x21b   : > { %v653_v17 = vpop.xlane.xlu1 %652 }
 0x21c   : > { %v654_v18 = vmul.f32 0.015625, %v653_v17 }
 0x21e   : > { %v655_v19 = vsub.f32 %v649_v12, %v654_v18 }
 0x21f   : > { %v668_v29 = vpop.permute.xlu1 %667 }
 0x220   : > { %v656_v20 = vmul.f32 %v655_v19, %v655_v19 }
 0x222   : > { %v657_v22 = vsel %vm650_vm11, %v656_v20, 0.0 }
 0x223   : > { %658 = vadd.xlane.f32.xlu0 %v657_v22 }
 0x239   : > { %674 = vperm.xlu0 %1256, %v671_v23  }
 0x2b0   : > { %v659_v24 = vpop.xlane.xlu0 %658 }
 0x2b1   : > { %v660_v25 = vmul.f32 0.015625, %v659_v24 }
 0x2b3   : > { %v661_v27 = vadd.f32 1e-05, %v660_v25 }
 0x2b5   : > { %1260 = vrsqrt.f32 %v661_v27 }
 0x2b8   : > { %v675_v32 = vpop.permute.xlu0 %674 }
 0x2bf   : > { %v1261_v28 = vpop.eup %1260 }
 0x2c0   : > { %v663_v30 = vmul.f32 %v1261_v28, %v655_v19 }
 0x2c2   : > { %v670_v31 = vmul.f32 %v668_v29, %v663_v30 }
 0x2c4   : > { %v677_v33 = vadd.f32 %v675_v32, %v670_v31 }
 0x2c6   : > { %v1482_v34 = vrot.slane %v677_v33, 4 }
 0x2c8   : > { %692 = vrot.lane.b32.xlu1 %v1482_v34, %s1279_s16  ;;  %686 = vrot.lane.b32.xlu0 %v1482_v34, %s1280_s17  ;;  %v1507_v35 = vsel %vm557_vm6, %v1379_v0, %v1482_v34  ;;  %v844_v0 = vld [vmem:[%s1643_s8] sm:$0xff] }
 0x2cc   : > { %708 = vrot.lane.b32.xlu1 %v1482_v34, %s1277_s2  ;;  %702 = vrot.lane.b32.xlu0 %v1482_v34, %s1275_s14 }
 0x2d0   : > { %734 = vrot.lane.b32.xlu1 %v1482_v34, %s1274_s30  ;;  %718 = vrot.lane.b32.xlu0 %v1482_v34, %s1282_s19 }
 0x2d4   : > { %740 = vrot.lane.b32.xlu1 %v1482_v34, %s1276_s15  ;;  %750 = vrot.lane.b32.xlu0 %v1482_v34, %s1284_s21 }
 0x2d8   : > { %724 = vrot.lane.b32.xlu1 %v1482_v34, %s1281_s18  ;;  %766 = vrot.lane.b32.xlu0 %v1482_v34, %s1291_s27 }
 0x2dc   : > { %756 = vrot.lane.b32.xlu1 %v1482_v34, %s1657_s20  ;;  %684 = vrot.lane.b32.xlu0 %v1507_v35, %s1280_s17 }
 0x2e0   : > { %782 = vrot.lane.b32.xlu1 %v1482_v34, %s1658_s22  ;;  %716 = vrot.lane.b32.xlu0 %v1507_v35, %s1282_s19 }
 0x2e4   : > { %788 = vrot.lane.b32.xlu1 %v1482_v34, %s1659_s23  ;;  %732 = vrot.lane.b32.xlu0 %v1507_v35, %s1274_s30  ;;  %s1660_s30 = smov 57  }
 0x2e8   : > { %738 = vrot.lane.b32.xlu0 %v1507_v35, %s1276_s15  ;;  %700 = vrot.lane.b32.xlu1 %v1507_v35, %s1275_s14 }
 0x2ec   : > { %748 = vrot.lane.b32.xlu0 %v1507_v35, %s1284_s21  ;;  %706 = vrot.lane.b32.xlu1 %v1507_v35, %s1277_s2 }
 0x2f0   : > { %764 = vrot.lane.b32.xlu0 %v1507_v35, %s1291_s27  ;;  %690 = vrot.lane.b32.xlu1 %v1507_v35, %s1279_s16 }
 0x2f4   : > { %780 = vrot.lane.b32.xlu0 %v1507_v35, %s1658_s22  ;;  %722 = vrot.lane.b32.xlu1 %v1507_v35, %s1281_s18 }
 0x2f8   : > { %786 = vrot.lane.b32.xlu0 %v1507_v35, %s1659_s23  ;;  %754 = vrot.lane.b32.xlu1 %v1507_v35, %s1657_s20  ;;  %s1106_s20 = sshll.u32 %s1662_s25, 3 }
 0x2fc   : > { %796 = vrot.lane.b32.xlu0 %v1507_v35, %s1293_s29  ;;  %772 = vrot.lane.b32.xlu1 %v1482_v34, %s1660_s30 }
 0x300   : > { %802 = vrot.lane.b32.xlu0 %v1507_v35, %s1292_s28  ;;  %770 = vrot.lane.b32.xlu1 %v1507_v35, %s1660_s30  ;;  %s435_s30 = scalar_lea.vmem %s1648_s13, %s1106_s20 }
 0x304   : > { %847 = vperm.xlu0 %1256, %v844_v0   ;;  %798 = vrot.lane.b32.xlu1 %v1482_v34, %s1293_s29 }
 0x308   : > { %804 = vrot.lane.b32.xlu1 %v1482_v34, %s1292_s28 }
 0x33a   : > { %v693_v36 = vpop.permute.xlu1 %692  ;;  %v687_v38 = vpop.permute.xlu0 %686 }
 0x33b   : > { %v697_v59 = vsel %vm447_vm3, %v687_v38, %v693_v36 }
 0x33c   : > { %v699_v4 = vmul.f32 %v697_v59, %v1431_v21 }
 0x33e   : > { %v709_v39 = vpop.permute.xlu1 %708  ;;  %v703_v40 = vpop.permute.xlu0 %702 }
 0x33f   : > { %v713_v62 = vsel %vm460_vm2, %v703_v40, %v709_v39 }
 0x340   : > { %v715_v9 = vmul.f32 %v713_v62, %v1427_v16 }
 0x342   : > { %v735_v41 = vpop.permute.xlu1 %734  ;;  %v719_v42 = vpop.permute.xlu0 %718  ;;  %v815_v22 = vrot.slane %v715_v9, 4 }
 0x346   : > { %v741_v44 = vpop.permute.xlu1 %740  ;;  %v751_v45 = vpop.permute.xlu0 %750 }
 0x347   : > { %v745_v5 = vsel %vm486_vm1, %v735_v41, %v741_v44 }
 0x348   : > { %v747_v14 = vmul.f32 %v745_v5, %v1425_v15 }
 0x34a   : > { %v725_v46 = vpop.permute.xlu1 %724  ;;  %v767_v47 = vpop.permute.xlu0 %766  ;;  %v822_v25 = vrot.slane %v747_v14, 4 }
 0x34b   : > { %v729_v17 = vsel %vm473_vm4, %v719_v42, %v725_v46 }
 0x34c   : > { %v731_v27 = vmul.f32 %v729_v17, %v1436_v26  ;;  %v952_v17 = vld [vmem:[%s1645_s10] sm:$0xff] }
 0x34e   : > { %v757_v48 = vpop.permute.xlu1 %756  ;;  %v685_v49 = vpop.permute.xlu0 %684 }
 0x34f   : > { %v761_v33 = vsel %vm499_vm5, %v751_v45, %v757_v48 }
 0x350   : > { %v763_v40 = vmul.f32 %v761_v33, %v1441_v37 }
 0x352   : > { %v783_v51 = vpop.permute.xlu1 %782  ;;  %v717_v52 = vpop.permute.xlu0 %716 }
 0x356   : > { %v789_v53 = vpop.permute.xlu1 %788  ;;  %v733_v54 = vpop.permute.xlu0 %732 }
 0x357   : > { %v793_v41 = vsel %vm525_vm7, %v783_v51, %v789_v53 }
 0x35a   : > { %v739_v55 = vpop.permute.xlu0 %738  ;;  %v701_v56 = vpop.permute.xlu1 %700 }
 0x35b   : > { %v744_v63 = vsel %vm486_vm1, %v733_v54, %v739_v55  ;;  %v795_v54 = vmul.f32 %v793_v41, %v1446_v43  ;;  %vm970_vm1 = vcmask 162816  }
 0x35c   : > { %v746_v10 = vmul.f32 %v744_v63, %v1425_v15 }
 0x35d   : > { %v836_v59 = vrot.slane %v795_v54, 4 }
 0x35e   : > { %v749_v57 = vpop.permute.xlu0 %748  ;;  %v707_v58 = vpop.permute.xlu1 %706  ;;  %v821_v23 = vrot.slane %v746_v10, 4 }
 0x35f   : > { %v712_v61 = vsel %vm460_vm2, %v701_v56, %v707_v58 }
 0x360   : > { %v714_v3 = vmul.f32 %v712_v61, %v1427_v16  ;;  %v823_v31 = vsel %vm557_vm6, %v821_v23, %v822_v25  ;;  %v841_v32 = vsel %vm557_vm6, %v731_v27, %v821_v23 }
 0x361   : > { %v1209_v39 = vpack.c.bf16 %v823_v31, %v841_v32 }
 0x362   : > { %v814_v6 = vrot.slane %v714_v3, 4  ;;  %v765_v7 = vpop.permute.xlu0 %764  ;;  %v691_v8 = vpop.permute.xlu1 %690 }
 0x363   : > { %v696_v11 = vsel %vm447_vm3, %v685_v49, %v691_v8 }
 0x364   : > { %v698_v12 = vmul.f32 %v696_v11, %v1431_v21  ;;  %v840_v13 = vsel %vm557_vm6, %v699_v4, %v814_v6  ;;  %v816_v21 = vsel %vm557_vm6, %v814_v6, %v815_v22 }
 0x366   : > { %v781_v18 = vpop.permute.xlu0 %780  ;;  %v723_v19 = vpop.permute.xlu1 %722  ;;  %v1203_v20 = vpack.c.bf16 %v840_v13, %v698_v12 }
 0x367   : > { %v728_v24 = vsel %vm473_vm4, %v717_v52, %v723_v19  ;;  %v829_v52 = vrot.slane %v763_v40, 4 }
 0x368   : > { %v730_v16 = vmul.f32 %v728_v24, %v1436_v26  ;;  %1204 = vmatpush3.bf16.msra.mxu1 %v1203_v20 }
 0x369   : > { %1205 = vmatprep.subr.bf16.mxu1 %v1278_v1 }
 0x36a   : > { %v787_v15 = vpop.permute.xlu0 %786  ;;  %v755_v28 = vpop.permute.xlu1 %754  ;;  %v1206_v29 = vpack.c.bf16 %v730_v16, %v816_v21  ;;  %v945_v16 = vld [vmem:[%s1644_s9] sm:$0xff] }
 0x36b   : > { %v760_v30 = vsel %vm499_vm5, %v749_v57, %v755_v28  ;;  %v792_v26 = vsel %vm525_vm7, %v781_v18, %v787_v15  ;;  %v964_v18 = vld [vmem:[%s1647_s12] sm:$0xff] }
 0x36c   : > { %v762_v0 = vmul.f32 %v760_v30, %v1441_v37  ;;  %1207 = vmatpush3.bf16.msra.mxu1 %v1206_v29  ;;  %v794_v46 = vmul.f32 %v792_v26, %v1446_v43 }
 0x36d   : > { %1208 = vmatprep.subr.bf16.mxu1 %v1278_v1 }
 0x36e   : > { %v828_v36 = vrot.slane %v762_v0, 4  ;;  %v773_v38 = vpop.permute.xlu1 %772  ;;  %v797_v42 = vpop.permute.xlu0 %796  ;;  %v835_v53 = vrot.slane %v794_v46, 4 }
 0x36f   : > { %v777_v44 = vsel %vm512_vm8, %v767_v47, %v773_v38 }
 0x370   : > { %1210 = vmatpush3.bf16.msra.mxu1 %v1209_v39  ;;  %v842_v45 = vsel %vm557_vm6, %v1482_v34, %v828_v36  ;;  %v779_v37 = vmul.f32 %v777_v44, %v1452_v50  ;;  %v830_v55 = vsel %vm557_vm6, %v828_v36, %v829_v52  ;;  %v837_v62 = vsel %vm557_vm6, %v835_v53, %v836_v59  ;;  %v963_v36 = vld [vmem:[%s1646_s11] sm:$0xff] }
 0x371   : > { %1211 = vmatprep.subr.bf16.mxu1 %v1278_v1  ;;  %v1212_v48 = vpack.c.bf16 %v842_v45, %v1507_v35 }
 0x372   : > { %v771_v49 = vpop.permute.xlu1 %770  ;;  %v803_v56 = vpop.permute.xlu0 %802  ;;  %v843_v61 = vsel %vm557_vm6, %v779_v37, %v835_v53 }
 0x373   : > { %v776_v51 = vsel %vm512_vm8, %v765_v7, %v771_v49  ;;  %v808_v43 = vsel %vm538_vm9, %v797_v42, %v803_v56  ;;  %v1218_v63 = vpack.c.bf16 %v837_v62, %v843_v61  ;;  %v682_v7 = vld [vmem:[%s1642_s7] sm:$0xff] }
 0x374   : > { %v778_v47 = vmul.f32 %v776_v51, %v1452_v50  ;;  %1213 = vmatpush3.bf16.msra.mxu1 %v1212_v48  ;;  %v810_v4 = vmul.f32 %v1462_v60, %v808_v43 }
 0x375   : > { %1214 = vmatprep.subr.bf16.mxu1 %v1278_v1 }
 0x376   : > { %v799_v57 = vpop.permute.xlu1 %798  ;;  %v1215_v58 = vpack.c.bf16 %v778_v47, %v830_v55 }
 0x378   : > { %1216 = vmatpush3.bf16.msra.mxu1 %v1215_v58 }
 0x379   : > { %1217 = vmatprep.subr.bf16.mxu1 %v1278_v1 }
 0x37a   : > { %v805_v50 = vpop.permute.xlu1 %804 }
 0x37b   : > { %v809_v3 = vsel %vm538_vm9, %v799_v57, %v805_v50 }
 0x37c   : > { %v811_v5 = vmul.f32 %v1462_v60, %v809_v3  ;;  %1219 = vmatpush3.bf16.msra.mxu1 %v1218_v63 }
 0x37d   : > { %1220 = vmatprep.subr.bf16.mxu1 %v1278_v1 }
 0x37e   : > { %v1221_v6 = vpack.c.bf16 %v811_v5, %v810_v4 }
 0x380   : > { %1223 = vmatpush3.bf16.msk.msra.mxu1 %vm1222_vm14, %v1221_v6 }
 0x383   : > { %1185 = vmatmul.mubr.msk.f32.vlgmr.msra.gmra.mrb[0].mxu1 %vm850_vm15, %v682_v7  ;;  %v848_v8 = vpop.permute.xlu0 %847 }
 0x456   : > { %v923_v9 = vpop.f32.mrb[0].mxu1 }
 0x457   : > { %v924_v10 = vadd.f32 %v923_v9, %v848_v8  ;;  %v1186_v11 = vpop.f32.mrb[1].mxu1 }
 0x459   : > { %v928_v12 = vmul.f32 1.442695, %v924_v10  ;;  %vm927_vm0 = vcmp.gt.f32.partialorder %v924_v10, 0.0 }
 0x45b   : > { %1262 = vpow2.f32 %v928_v12 }
 0x465   : > { %v1263_v60 = vpop.eup %1262 }
 0x466   : > { %v1113_v13 = vadd.f32 -1.0, %v1263_v60 }
 0x468   : > { %v931_v1 = vsel %vm927_vm0, %v924_v10, %v1113_v13 }
 0x469   : > { %v932_v14 = vsel %vm650_vm11, %v931_v1, 0.0 }
 0x46a   : > { %933 = vadd.xlane.f32.xlu1 %v932_v14 }
 0x47b   : > { %955 = vperm.xlu1 %1257, %v952_v17  }
 0x47f   : > { %967 = vperm.xlu1 %1257, %v964_v18  }
 0x4f7   : > { %v934_v19 = vpop.xlane.xlu1 %933 }
 0x4f8   : > { %v935_v20 = vmul.f32 0.015625, %v934_v19 }
 0x4fa   : > { %v936_v22 = vsub.f32 %v931_v1, %v935_v20 }
 0x4fb   : > { %v956_v31 = vpop.permute.xlu1 %955 }
 0x4fc   : > { %v937_v23 = vmul.f32 %v936_v22, %v936_v22 }
 0x4fe   : > { %v938_v24 = vsel %vm650_vm11, %v937_v23, 0.0 }
 0x4ff   : > { %939 = vadd.xlane.f32.xlu0 %v938_v24  ;;  %v968_v38 = vpop.permute.xlu1 %967 }
 0x515   : > { %948 = vperm.xlu0 %1256, %v945_v16  }
 0x58c   : > { %v940_v25 = vpop.xlane.xlu0 %939 }
 0x58d   : > { %v941_v27 = vmul.f32 0.015625, %v940_v25 }
 0x58f   : > { %v942_v21 = vadd.f32 1e-05, %v941_v27 }
 0x591   : > { %1264 = vrsqrt.f32 %v942_v21 }
 0x594   : > { %v949_v29 = vpop.permute.xlu0 %948 }
 0x59b   : > { %v1265_v15 = vpop.eup %1264 }
 0x59c   : > { %v944_v28 = vmul.f32 %v1265_v15, %v936_v22 }
 0x59e   : > { %v951_v30 = vmul.f32 %v949_v29, %v944_v28 }
 0x5a0   : > { %v958_v32 = vadd.f32 %v956_v31, %v951_v30 }
 0x5a2   : > { %v960_v33 = vrot.slane %v958_v32, 4 }
 0x5a4   : > { %v962_v0 = vsel %vm557_vm6, %v1482_v34, %v960_v33 }
 0x5a5   : > { %v1225_v26 = vpack.c.bf16 %v962_v0, %v1507_v35 }
 0x5a7   : > { %1226 = vmatpush3.bf16.msra.mxu0 %v1225_v26 }
 0x5a8   : > { %1191 = vmatprep.subr.mxu0 %v1288_v2 }
 0x5ab   : > { %1192 = vmatpush3.msk.msra.mxu0 %vm557_vm6, %v960_v33 }
 0x5ac   : > { %1194 = vmatmul.mubr.msk.f32.vlgmr.msra.gmra.mrb[2].mxu0 %vm970_vm1, %v963_v36 }
 0x67f   : > { %v1042_v34 = vpop.f32.mrb[2].mxu0 }
 0x680   : > { %v1043_v39 = vadd.f32 %v1042_v34, %v968_v38  ;;  %v1195_v35 = vpop.f32.mrb[3].mxu0 }
 0x682   : > { %1046 = vst.msk [vmem:[%s435_s30] sm:$0xff] %vm650_vm11, %v1043_v39 }
 0x683 PF: > { %s23_s24 = sadd.s32 1, %s1272_s24  }
 0x684   : > { %p20_p4 = scmp.ge.s32.totalorder %s23_s24, 4  }
 0x686   :  { %22 = sbr.rel (!%p20_p4) target bundleno = 1 (0x1), region = 102 }

</bundles_post_ra>
